<compile_context>
chip_gen: v7x
topology: tpu7x:2x2x1
jax: 0.10.0
libtpu: 0.0.40
codegen_flags: <defaults>
</compile_context>

<pallas_src>
import math

import jax
import jax.numpy as jnp
from jax import lax
from jax.experimental import pallas as pl
from jax.experimental.pallas import tpu as pltpu

# ----- small synthetic BERT config (shapes consistent with the module) -----
VOCAB = 100
TYPE_VOCAB = 2
MAX_POS = 16
HIDDEN = 32
HEADS = 2
HEAD_DIM = HIDDEN // HEADS
INTER = 64
LAYERS = 2
NUM_CLASSES = 10
LN_EPS = 1e-12
MASK_NEG = -1e9          # additive mask for padded / cross-batch / cross-head keys
PAD_OUT = 128            # lane-dense padded classifier width
LVEC_W = 3 * HIDDEN      # packed per-layer bias/LN slab width (96)


# ---------------- fused forward kernel (grid = (batch_chunks, layers)) ----------------
def _make_kernel(n_tok, batch_chunk, seq_len):
    """Kernel for one grid step: `batch_chunk` batch elements flattened into
    `n_tok = batch_chunk * seq_len` token rows; one encoder layer per step along
    the second ('arbitrary') grid axis, activations carried in VMEM scratch."""
    bf16 = jnp.bfloat16
    f32 = jnp.float32
    d = HEAD_DIM
    dn_qkT = (((1,), (1,)), ((), ()))   # contract last axes: q @ k^T without transpose

    def layer_norm(y, g, b):
        mu = jnp.mean(y, axis=-1, keepdims=True)
        var = jnp.mean((y - mu) ** 2, axis=-1, keepdims=True)
        return (y - mu) * lax.rsqrt(var + LN_EPS) * g + b

    def kernel(x_ref, mask_ref, qkv_w_ref, wo_ref, fw1_ref, fw2_ref,
               lvec_ref, gvec_ref, head_w_ref, o_ref, x_sc):
        l = pl.program_id(1)

        # ---- first layer step: embedding LayerNorm into the carried scratch ----
        @pl.when(l == 0)
        def _():
            x0 = x_ref[0]                                           # (n_tok, H) f32
            x_sc[...] = layer_norm(x0,
                                   gvec_ref[0:1, 0:HIDDEN],
                                   gvec_ref[1:2, 0:HIDDEN])
            # embedding dropout: identity at inference

        x = x_sc[...]                                               # (n_tok, H) f32

        lvec = lvec_ref[0]                                          # (8, 96) packed per-layer vectors
        qkv_b = lvec[0:1, 0:3 * HIDDEN]
        bo    = lvec[1:2, 0:HIDDEN]
        ln1_g = lvec[2:3, 0:HIDDEN]
        ln1_b = lvec[3:4, 0:HIDDEN]
        fb1   = lvec[4:5, 0:INTER]
        fb2   = lvec[5:6, 0:HIDDEN]
        ln2_g = lvec[6:7, 0:HIDDEN]
        ln2_b = lvec[7:8, 0:HIDDEN]

        # ---- fused QKV projection (1/sqrt(head_dim) already folded into Q) ----
        qkv = jnp.dot(x.astype(bf16), qkv_w_ref[0],
                      preferred_element_type=f32) + qkv_b           # (n_tok, 3H) f32
        qkv_bf = qkv.astype(bf16)                                   # cast once, slice per head

        # ---- head-batched attention: heads stacked along sublanes ----
        q_st = jnp.concatenate(
            [qkv_bf[:, h * d:(h + 1) * d] for h in range(HEADS)], axis=0)             # (HN, d)
        k_st = jnp.concatenate(
            [qkv_bf[:, HIDDEN + h * d:HIDDEN + (h + 1) * d] for h in range(HEADS)], axis=0)
        v_st = jnp.concatenate(
            [qkv_bf[:, 2 * HIDDEN + h * d:2 * HIDDEN + (h + 1) * d] for h in range(HEADS)], axis=0)

        s = lax.dot_general(q_st, k_st, dn_qkT, preferred_element_type=f32)           # (HN, HN)
        s = s + mask_ref[0]          # blocks cross-head / cross-batch / padded keys
        s = s - jnp.max(s, axis=-1, keepdims=True)
        p = jnp.exp(s)
        p = (p * pl.reciprocal(jnp.sum(p, axis=-1, keepdims=True), approx=True)).astype(bf16)
        ctx_st = jnp.dot(p, v_st, preferred_element_type=f32)                         # (HN, d)
        ctx = jnp.concatenate(
            [ctx_st[h * n_tok:(h + 1) * n_tok, :] for h in range(HEADS)],
            axis=1).astype(bf16)                                                       # (n_tok, H)
        attn = jnp.dot(ctx, wo_ref[0], preferred_element_type=f32) + bo
        x = layer_norm(x + attn, ln1_g, ln1_b)

        # ---- feed-forward ----
        hmid = jnp.dot(x.astype(bf16), fw1_ref[0], preferred_element_type=f32) + fb1  # (n_tok, I)
        # TODO(synk): HF BERT uses exact erf-GELU; tanh approximation used (Mosaic-safe).
        c = math.sqrt(2.0 / math.pi)
        hmid = 0.5 * hmid * (1.0 + jnp.tanh(c * (hmid + 0.044715 * hmid * hmid * hmid)))
        ffn = jnp.dot(hmid.astype(bf16), fw2_ref[0], preferred_element_type=f32) + fb2
        x = layer_norm(x + ffn, ln2_g, ln2_b)
        x_sc[...] = x                                               # carry to next layer step

        # ---- last layer step: pooler([CLS] per batch element) + classifier ----
        @pl.when(l == LAYERS - 1)
        def _():
            cls_rows = jnp.concatenate(
                [x[b * seq_len:b * seq_len + 1, :] for b in range(batch_chunk)],
                axis=0)                                             # (batch_chunk, H)
            cls_w = head_w_ref[:, 0:PAD_OUT]                        # (H, 128) bf16, lane-aligned
            pool_w = head_w_ref[:, PAD_OUT:PAD_OUT + HIDDEN]        # (H, H)   bf16
            pool_b = gvec_ref[2:3, 0:HIDDEN]
            cls_b = gvec_ref[3:4, 0:PAD_OUT]
            pooled = jnp.tanh(jnp.dot(cls_rows.astype(bf16), pool_w,
                                      preferred_element_type=f32) + pool_b)
            # dropout(pooled_output): identity at inference
            o_ref[0] = jnp.dot(pooled.astype(bf16), cls_w,
                               preferred_element_type=f32) + cls_b  # (batch_chunk, 128)

    return kernel


# ---------------- deterministic parameter init ----------------
def init_params(key):
    keys = iter(jax.random.split(key, 128))

    def dense(fan_in, fan_out):
        return jax.random.normal(next(keys), (fan_in, fan_out), jnp.float32) * 0.02

    p = {
        "word_emb": jax.random.normal(next(keys), (VOCAB, HIDDEN), jnp.float32) * 0.02,
        "pos_emb": jax.random.normal(next(keys), (MAX_POS, HIDDEN), jnp.float32) * 0.02,
        "type_emb": jax.random.normal(next(keys), (TYPE_VOCAB, HIDDEN), jnp.float32) * 0.02,
        "emb_ln_g": jnp.ones((HIDDEN,), jnp.float32),
        "emb_ln_b": jnp.zeros((HIDDEN,), jnp.float32),
        "layers": [],
        "pool_w": dense(HIDDEN, HIDDEN),
        "pool_b": jnp.zeros((HIDDEN,), jnp.float32),
        "cls_w": dense(HIDDEN, NUM_CLASSES),
        "cls_b": jnp.zeros((NUM_CLASSES,), jnp.float32),
    }
    for _ in range(LAYERS):
        p["layers"].append({
            "wq": dense(HIDDEN, HIDDEN), "bq": jnp.zeros((HIDDEN,), jnp.float32),
            "wk": dense(HIDDEN, HIDDEN), "bk": jnp.zeros((HIDDEN,), jnp.float32),
            "wv": dense(HIDDEN, HIDDEN), "bv": jnp.zeros((HIDDEN,), jnp.float32),
            "wo": dense(HIDDEN, HIDDEN), "bo": jnp.zeros((HIDDEN,), jnp.float32),
            "ln1_g": jnp.ones((HIDDEN,), jnp.float32), "ln1_b": jnp.zeros((HIDDEN,), jnp.float32),
            "w1": dense(HIDDEN, INTER), "b1": jnp.zeros((INTER,), jnp.float32),
            "w2": dense(INTER, HIDDEN), "b2": jnp.zeros((HIDDEN,), jnp.float32),
            "ln2_g": jnp.ones((HIDDEN,), jnp.float32), "ln2_b": jnp.zeros((HIDDEN,), jnp.float32),
        })
    return p


# ---------------- forward pass (MyBertClassifier.forward) ----------------
def bert_classifier_forward(params, input_ids, attention_mask, grid_programs=1):
    # grid_programs=1: fold the whole batch into one grid step (best on single-TC
    # v5e/v6e).  On v7x set grid_programs=2 so the "parallel" axis fills both TCs.
    B, S = input_ids.shape
    assert B % grid_programs == 0
    G = grid_programs
    Bc = B // G                  # batch elements folded into one grid step
    N = Bc * S                   # token rows per grid step
    HN = HEADS * N               # head-stacked rows of the score matrix
    L = LAYERS
    bf16 = jnp.bfloat16
    f32 = jnp.float32

    # --- BERT embeddings: gathers stay in plain JAX (glue); token_type_ids == 0 ---
    x = (params["word_emb"][input_ids]
         + params["pos_emb"][jnp.arange(S)][None, :, :]
         + params["type_emb"][jnp.zeros((B, S), jnp.int32)]).astype(f32)
    x = x.reshape(G, N, HIDDEN)                       # batch folded into token rows

    # --- additive mask for the head-stacked, batch-folded (HN, HN) score matrix ---
    pos = jnp.arange(HN)
    head_id = pos // N
    bat_id = (pos % N) // S
    tok_id = pos % S
    same_block = ((head_id[:, None] == head_id[None, :])
                  & (bat_id[:, None] == bat_id[None, :]))
    key_mask = attention_mask.astype(jnp.int32)
    chunks = []
    for g in range(G):
        key_valid = key_mask[g * Bc + bat_id, tok_id] > 0            # (HN,)
        valid = same_block & key_valid[None, :]
        chunks.append(jnp.where(valid, 0.0, MASK_NEG).astype(f32))
    mask_add = jnp.stack(chunks)                                      # (G, HN, HN)

    layers = params["layers"]
    scale = 1.0 / math.sqrt(HEAD_DIM)

    def pad_row(v, w):
        return jnp.zeros((w,), f32).at[: v.shape[0]].set(v)

    # layer-streamed matmul weights (bf16); 1/sqrt(head_dim) folded into the Q block
    qkv_w = jnp.stack([jnp.concatenate([lp["wq"] * scale, lp["wk"], lp["wv"]], axis=1)
                       for lp in layers]).astype(bf16)                # (L, H, 3H)
    wo = jnp.stack([lp["wo"] for lp in layers]).astype(bf16)          # (L, H, H)
    fw1 = jnp.stack([lp["w1"] for lp in layers]).astype(bf16)         # (L, H, I)
    fw2 = jnp.stack([lp["w2"] for lp in layers]).astype(bf16)         # (L, I, H)

    # packed per-layer bias / LayerNorm slab: one (8, 96) f32 tile per layer
    lvec = jnp.stack([
        jnp.stack([
            jnp.concatenate([lp["bq"] * scale, lp["bk"], lp["bv"]]),
            pad_row(lp["bo"], LVEC_W), pad_row(lp["ln1_g"], LVEC_W), pad_row(lp["ln1_b"], LVEC_W),
            pad_row(lp["b1"], LVEC_W), pad_row(lp["b2"], LVEC_W),
            pad_row(lp["ln2_g"], LVEC_W), pad_row(lp["ln2_b"], LVEC_W)])
        for lp in layers])                                            # (L, 8, 96)

    # packed global vectors: emb LN gamma/beta, pooler bias, padded classifier bias
    gvec = jnp.stack([pad_row(params["emb_ln_g"], PAD_OUT),
                      pad_row(params["emb_ln_b"], PAD_OUT),
                      pad_row(params["pool_b"], PAD_OUT),
                      pad_row(params["cls_b"], PAD_OUT)])             # (4, 128)

    # packed classifier (lane-dense, padded) + pooler weights, bf16
    cls_w_pad = jnp.zeros((HIDDEN, PAD_OUT), f32).at[:, :NUM_CLASSES].set(params["cls_w"])
    head_w = jnp.concatenate([cls_w_pad, params["pool_w"]], axis=1).astype(bf16)  # (H, 128+H)

    const1 = dict(pipeline_mode=pl.Buffered(1))   # constant-index blocks: no double-buffer

    in_specs = [
        pl.BlockSpec((1, N, HIDDEN), lambda g, l: (g, 0, 0)),             # folded embeddings
        pl.BlockSpec((1, HN, HN), lambda g, l: (g, 0, 0)),                # additive mask
        pl.BlockSpec((1, HIDDEN, 3 * HIDDEN), lambda g, l: (l, 0, 0)),    # layer-streamed weights
        pl.BlockSpec((1, HIDDEN, HIDDEN), lambda g, l: (l, 0, 0)),
        pl.BlockSpec((1, HIDDEN, INTER), lambda g, l: (l, 0, 0)),
        pl.BlockSpec((1, INTER, HIDDEN), lambda g, l: (l, 0, 0)),
        pl.BlockSpec((1, 8, LVEC_W), lambda g, l: (l, 0, 0)),             # packed per-layer vectors
        pl.BlockSpec((4, PAD_OUT), lambda g, l: (0, 0), **const1),        # packed global vectors
        pl.BlockSpec((HIDDEN, PAD_OUT + HIDDEN), lambda g, l: (0, 0), **const1),  # cls+pool W
    ]

    kernel = _make_kernel(N, Bc, S)
    out = pl.pallas_call(
        kernel,
        grid=(G, L),
        in_specs=in_specs,
        out_specs=pl.BlockSpec((1, Bc, PAD_OUT), lambda g, l: (g, 0, 0)),
        out_shape=jax.ShapeDtypeStruct((G, Bc, PAD_OUT), f32),
        scratch_shapes=[pltpu.VMEM((N, HIDDEN), f32)],                    # x carried across layers
        compiler_params=pltpu.CompilerParams(
            dimension_semantics=("parallel", "arbitrary")),
    )(x, mask_add, qkv_w, wo, fw1, fw2, lvec, gvec, head_w)

    return out.reshape(B, PAD_OUT)[:, :NUM_CLASSES]                       # (B, NUM_CLASSES)


if __name__ == "__main__":
    key = jax.random.PRNGKey(0)
    kp, ki = jax.random.split(key)
    params = init_params(kp)

    B, S = 2, 8
    input_ids = jax.random.randint(ki, (B, S), 0, VOCAB, dtype=jnp.int32)
    attention_mask = jnp.array([[1, 1, 1, 1, 1, 1, 1, 1],
                                [1, 1, 1, 1, 1, 0, 0, 0]], dtype=jnp.int32)

    fwd = jax.jit(bert_classifier_forward)
    logits = jax.block_until_ready(fwd(params, input_ids, attention_mask))
    assert logits.shape == (B, NUM_CLASSES)
    print("KERNEL_OK")
</pallas_src>

<mosaic_0001>
module attributes {stable_mosaic.version = 11 : i64} {
  func.func @kernel(%arg0: i32, %arg1: i32, %arg2: memref<1x16x32xf32, #tpu.memory_space<vmem>>, %arg3: memref<1x32x32xf32, #tpu.memory_space<vmem>>, %arg4: memref<1x32x96xbf16, #tpu.memory_space<vmem>>, %arg5: memref<1x32x32xbf16, #tpu.memory_space<vmem>>, %arg6: memref<1x32x64xbf16, #tpu.memory_space<vmem>>, %arg7: memref<1x64x32xbf16, #tpu.memory_space<vmem>>, %arg8: memref<1x8x96xf32, #tpu.memory_space<vmem>>, %arg9: memref<4x128xf32, #tpu.memory_space<vmem>>, %arg10: memref<32x160xbf16, #tpu.memory_space<vmem>>, %arg11: memref<1x2x128xf32, #tpu.memory_space<vmem>>, %arg12: memref<16x32xf32, #tpu.memory_space<vmem>>) attributes {dimension_semantics = [#tpu.dimension_semantics<parallel>, #tpu.dimension_semantics<arbitrary>], iteration_bounds = array<i64: 1, 2>, scalar_prefetch = 0 : i64, scratch_operands = 1 : i64, tpu.core_type = #tpu.core_type<tc>, window_params = [{transform_indices = @transform_0, window_bounds = array<i64: 1, 16, 32>}, {transform_indices = @transform_1, window_bounds = array<i64: 1, 32, 32>}, {transform_indices = @transform_2, window_bounds = array<i64: 1, 32, 96>}, {transform_indices = @transform_3, window_bounds = array<i64: 1, 32, 32>}, {transform_indices = @transform_4, window_bounds = array<i64: 1, 32, 64>}, {transform_indices = @transform_5, window_bounds = array<i64: 1, 64, 32>}, {transform_indices = @transform_6, window_bounds = array<i64: 1, 8, 96>}, {pipeline_mode = #tpu.pipeline_mode<synchronous>, transform_indices = @transform_7, window_bounds = array<i64: 4, 128>}, {pipeline_mode = #tpu.pipeline_mode<synchronous>, transform_indices = @transform_8, window_bounds = array<i64: 32, 160>}, {transform_indices = @transform_9, window_bounds = array<i64: 1, 2, 128>}]} {
    %c0_i32 = arith.constant 0 : i32
    %0 = arith.cmpi eq, %arg1, %c0_i32 : i32
    %1 = arith.extui %0 : i1 to i32
    %c0_i32_0 = arith.constant 0 : i32
    %2 = arith.cmpi ne, %1, %c0_i32_0 : i32
    scf.if %2 {
      %c0_44 = arith.constant 0 : index
      %c0_45 = arith.constant 0 : index
      %c0_46 = arith.constant 0 : index
      %130 = vector.load %arg2[%c0_44, %c0_45, %c0_46] : memref<1x16x32xf32, #tpu.memory_space<vmem>>, vector<1x16x32xf32>
      %131 = vector.shape_cast %130 : vector<1x16x32xf32> to vector<16x32xf32>
      %c0_47 = arith.constant 0 : index
      %c0_48 = arith.constant 0 : index
      %132 = vector.load %arg9[%c0_47, %c0_48] : memref<4x128xf32, #tpu.memory_space<vmem>>, vector<1x32xf32>
      %c1 = arith.constant 1 : index
      %c0_49 = arith.constant 0 : index
      %133 = vector.load %arg9[%c1, %c0_49] : memref<4x128xf32, #tpu.memory_space<vmem>>, vector<1x32xf32>
      %cst_50 = arith.constant dense<0.000000e+00> : vector<16xf32>
      %134 = vector.multi_reduction <add>, %131, %cst_50 [1] : vector<16x32xf32> to vector<16xf32>
      %135 = vector.shape_cast %134 : vector<16xf32> to vector<16x1xf32>
      %cst_51 = arith.constant 3.200000e+01 : f32
      %136 = vector.broadcast %cst_51 : f32 to vector<16x1xf32>
      %137 = arith.divf %135, %136 : vector<16x1xf32>
      %138 = vector.broadcast %137 : vector<16x1xf32> to vector<16x32xf32>
      %139 = arith.subf %131, %138 : vector<16x32xf32>
      %140 = arith.mulf %139, %139 : vector<16x32xf32>
      %cst_52 = arith.constant dense<0.000000e+00> : vector<16xf32>
      %141 = vector.multi_reduction <add>, %140, %cst_52 [1] : vector<16x32xf32> to vector<16xf32>
      %142 = vector.shape_cast %141 : vector<16xf32> to vector<16x1xf32>
      %cst_53 = arith.constant 3.200000e+01 : f32
      %143 = vector.broadcast %cst_53 : f32 to vector<16x1xf32>
      %144 = arith.divf %142, %143 : vector<16x1xf32>
      %145 = vector.broadcast %137 : vector<16x1xf32> to vector<16x32xf32>
      %146 = arith.subf %131, %145 : vector<16x32xf32>
      %cst_54 = arith.constant 9.99999996E-13 : f32
      %147 = vector.broadcast %cst_54 : f32 to vector<16x1xf32>
      %148 = arith.addf %144, %147 : vector<16x1xf32>
      %149 = math.rsqrt %148 : vector<16x1xf32>
      %150 = vector.broadcast %149 : vector<16x1xf32> to vector<16x32xf32>
      %151 = arith.mulf %146, %150 : vector<16x32xf32>
      %152 = vector.broadcast %132 : vector<1x32xf32> to vector<16x32xf32>
      %153 = arith.mulf %151, %152 : vector<16x32xf32>
      %154 = vector.broadcast %133 : vector<1x32xf32> to vector<16x32xf32>
      %155 = arith.addf %153, %154 : vector<16x32xf32>
      %c0_55 = arith.constant 0 : index
      %c0_56 = arith.constant 0 : index
      %156 = vector.load %arg12[%c0_55, %c0_56] : memref<16x32xf32, #tpu.memory_space<vmem>>, vector<16x32xf32>
      tpu.vector_store %arg12[%c0_55, %c0_56], %155 {strides = array<i32>} : memref<16x32xf32, #tpu.memory_space<vmem>>, vector<16x32xf32>,
    } else {
    }
    %c0 = arith.constant 0 : index
    %c0_1 = arith.constant 0 : index
    %3 = vector.load %arg12[%c0, %c0_1] : memref<16x32xf32, #tpu.memory_space<vmem>>, vector<16x32xf32>
    %c0_2 = arith.constant 0 : index
    %c0_3 = arith.constant 0 : index
    %c0_4 = arith.constant 0 : index
    %4 = vector.load %arg8[%c0_2, %c0_3, %c0_4] : memref<1x8x96xf32, #tpu.memory_space<vmem>>, vector<1x8x96xf32>
    %5 = vector.shape_cast %4 : vector<1x8x96xf32> to vector<8x96xf32>
    %6 = vector.extract_strided_slice %5 {offsets = [0, 0], sizes = [1, 96], strides = [1, 1]} : vector<8x96xf32> to vector<1x96xf32>
    %7 = vector.extract_strided_slice %5 {offsets = [1, 0], sizes = [1, 32], strides = [1, 1]} : vector<8x96xf32> to vector<1x32xf32>
    %8 = vector.extract_strided_slice %5 {offsets = [2, 0], sizes = [1, 32], strides = [1, 1]} : vector<8x96xf32> to vector<1x32xf32>
    %9 = vector.extract_strided_slice %5 {offsets = [3, 0], sizes = [1, 32], strides = [1, 1]} : vector<8x96xf32> to vector<1x32xf32>
    %10 = vector.extract_strided_slice %5 {offsets = [4, 0], sizes = [1, 64], strides = [1, 1]} : vector<8x96xf32> to vector<1x64xf32>
    %11 = vector.extract_strided_slice %5 {offsets = [5, 0], sizes = [1, 32], strides = [1, 1]} : vector<8x96xf32> to vector<1x32xf32>
    %12 = vector.extract_strided_slice %5 {offsets = [6, 0], sizes = [1, 32], strides = [1, 1]} : vector<8x96xf32> to vector<1x32xf32>
    %13 = vector.extract_strided_slice %5 {offsets = [7, 0], sizes = [1, 32], strides = [1, 1]} : vector<8x96xf32> to vector<1x32xf32>
    %14 = arith.truncf %3 : vector<16x32xf32> to vector<16x32xbf16>
    %c0_5 = arith.constant 0 : index
    %c0_6 = arith.constant 0 : index
    %c0_7 = arith.constant 0 : index
    %15 = vector.load %arg4[%c0_5, %c0_6, %c0_7] : memref<1x32x96xbf16, #tpu.memory_space<vmem>>, vector<1x32x96xbf16>
    %16 = vector.shape_cast %15 : vector<1x32x96xbf16> to vector<32x96xbf16>
    %cst = arith.constant dense<0.000000e+00> : vector<16x96xf32>
    %17 = tpu.matmul %14, %16, %cst {dimension_numbers = #tpu.dot_dimension_numbers<[1], [0], [0], [1], [0, 0, 1, 1], [], []>} : vector<16x32xbf16>, vector<32x96xbf16>, vector<16x96xf32> -> vector<16x96xf32>
    %18 = vector.broadcast %6 : vector<1x96xf32> to vector<16x96xf32>
    %19 = arith.addf %17, %18 : vector<16x96xf32>
    %20 = arith.truncf %19 : vector<16x96xf32> to vector<16x96xbf16>
    %21 = vector.extract_strided_slice %20 {offsets = [0, 0], sizes = [16, 16], strides = [1, 1]} : vector<16x96xbf16> to vector<16x16xbf16>
    %22 = vector.extract_strided_slice %20 {offsets = [0, 16], sizes = [16, 16], strides = [1, 1]} : vector<16x96xbf16> to vector<16x16xbf16>
    %23 = tpu.concatenate %21, %22 in 0 : vector<16x16xbf16>, vector<16x16xbf16> -> vector<32x16xbf16>
    %24 = vector.extract_strided_slice %20 {offsets = [0, 32], sizes = [16, 16], strides = [1, 1]} : vector<16x96xbf16> to vector<16x16xbf16>
    %25 = vector.extract_strided_slice %20 {offsets = [0, 48], sizes = [16, 16], strides = [1, 1]} : vector<16x96xbf16> to vector<16x16xbf16>
    %26 = tpu.concatenate %24, %25 in 0 : vector<16x16xbf16>, vector<16x16xbf16> -> vector<32x16xbf16>
    %27 = vector.extract_strided_slice %20 {offsets = [0, 64], sizes = [16, 16], strides = [1, 1]} : vector<16x96xbf16> to vector<16x16xbf16>
    %28 = vector.extract_strided_slice %20 {offsets = [0, 80], sizes = [16, 16], strides = [1, 1]} : vector<16x96xbf16> to vector<16x16xbf16>
    %29 = tpu.concatenate %27, %28 in 0 : vector<16x16xbf16>, vector<16x16xbf16> -> vector<32x16xbf16>
    %cst_8 = arith.constant dense<0.000000e+00> : vector<32x32xf32>
    %30 = tpu.matmul %23, %26, %cst_8 {dimension_numbers = #tpu.dot_dimension_numbers<[1], [1], [0], [0], [0, 0, 1, 0], [], []>} : vector<32x16xbf16>, vector<32x16xbf16>, vector<32x32xf32> -> vector<32x32xf32>
    %c0_9 = arith.constant 0 : index
    %c0_10 = arith.constant 0 : index
    %c0_11 = arith.constant 0 : index
    %31 = vector.load %arg3[%c0_9, %c0_10, %c0_11] : memref<1x32x32xf32, #tpu.memory_space<vmem>>, vector<1x32x32xf32>
    %32 = vector.shape_cast %31 : vector<1x32x32xf32> to vector<32x32xf32>
    %33 = arith.addf %30, %32 : vector<32x32xf32>
    %cst_12 = arith.constant dense<0xFF800000> : vector<32xf32>
    %34 = vector.multi_reduction <maximumf>, %33, %cst_12 [1] : vector<32x32xf32> to vector<32xf32>
    %35 = vector.shape_cast %34 : vector<32xf32> to vector<32x1xf32>
    %36 = vector.broadcast %35 : vector<32x1xf32> to vector<32x32xf32>
    %37 = arith.subf %33, %36 : vector<32x32xf32>
    %38 = math.exp %37 : vector<32x32xf32>
    %cst_13 = arith.constant dense<0.000000e+00> : vector<32xf32>
    %39 = vector.multi_reduction <add>, %38, %cst_13 [1] : vector<32x32xf32> to vector<32xf32>
    %40 = vector.shape_cast %39 : vector<32xf32> to vector<32x1xf32>
    %41 = tpu.reciprocal %40 {approx = true} : vector<32x1xf32> -> vector<32x1xf32>
    %42 = vector.broadcast %41 : vector<32x1xf32> to vector<32x32xf32>
    %43 = arith.mulf %38, %42 : vector<32x32xf32>
    %44 = arith.truncf %43 : vector<32x32xf32> to vector<32x32xbf16>
    %cst_14 = arith.constant dense<0.000000e+00> : vector<32x16xf32>
    %45 = tpu.matmul %44, %29, %cst_14 {dimension_numbers = #tpu.dot_dimension_numbers<[1], [0], [0], [1], [0, 0, 1, 1], [], []>} : vector<32x32xbf16>, vector<32x16xbf16>, vector<32x16xf32> -> vector<32x16xf32>
    %46 = vector.extract_strided_slice %45 {offsets = [0, 0], sizes = [16, 16], strides = [1, 1]} : vector<32x16xf32> to vector<16x16xf32>
    %47 = vector.extract_strided_slice %45 {offsets = [16, 0], sizes = [16, 16], strides = [1, 1]} : vector<32x16xf32> to vector<16x16xf32>
    %48 = tpu.concatenate %46, %47 in 1 : vector<16x16xf32>, vector<16x16xf32> -> vector<16x32xf32>
    %49 = arith.truncf %48 : vector<16x32xf32> to vector<16x32xbf16>
    %c0_15 = arith.constant 0 : index
    %c0_16 = arith.constant 0 : index
    %c0_17 = arith.constant 0 : index
    %50 = vector.load %arg5[%c0_15, %c0_16, %c0_17] : memref<1x32x32xbf16, #tpu.memory_space<vmem>>, vector<1x32x32xbf16>
    %51 = vector.shape_cast %50 : vector<1x32x32xbf16> to vector<32x32xbf16>
    %cst_18 = arith.constant dense<0.000000e+00> : vector<16x32xf32>
    %52 = tpu.matmul %49, %51, %cst_18 {dimension_numbers = #tpu.dot_dimension_numbers<[1], [0], [0], [1], [0, 0, 1, 1], [], []>} : vector<16x32xbf16>, vector<32x32xbf16>, vector<16x32xf32> -> vector<16x32xf32>
    %53 = vector.broadcast %7 : vector<1x32xf32> to vector<16x32xf32>
    %54 = arith.addf %52, %53 : vector<16x32xf32>
    %55 = arith.addf %3, %54 : vector<16x32xf32>
    %cst_19 = arith.constant dense<0.000000e+00> : vector<16xf32>
    %56 = vector.multi_reduction <add>, %55, %cst_19 [1] : vector<16x32xf32> to vector<16xf32>
    %57 = vector.shape_cast %56 : vector<16xf32> to vector<16x1xf32>
    %cst_20 = arith.constant 3.200000e+01 : f32
    %58 = vector.broadcast %cst_20 : f32 to vector<16x1xf32>
    %59 = arith.divf %57, %58 : vector<16x1xf32>
    %60 = vector.broadcast %59 : vector<16x1xf32> to vector<16x32xf32>
    %61 = arith.subf %55, %60 : vector<16x32xf32>
    %62 = arith.mulf %61, %61 : vector<16x32xf32>
    %cst_21 = arith.constant dense<0.000000e+00> : vector<16xf32>
    %63 = vector.multi_reduction <add>, %62, %cst_21 [1] : vector<16x32xf32> to vector<16xf32>
    %64 = vector.shape_cast %63 : vector<16xf32> to vector<16x1xf32>
    %cst_22 = arith.constant 3.200000e+01 : f32
    %65 = vector.broadcast %cst_22 : f32 to vector<16x1xf32>
    %66 = arith.divf %64, %65 : vector<16x1xf32>
    %67 = vector.broadcast %59 : vector<16x1xf32> to vector<16x32xf32>
    %68 = arith.subf %55, %67 : vector<16x32xf32>
    %cst_23 = arith.constant 9.99999996E-13 : f32
    %69 = vector.broadcast %cst_23 : f32 to vector<16x1xf32>
    %70 = arith.addf %66, %69 : vector<16x1xf32>
    %71 = math.rsqrt %70 : vector<16x1xf32>
    %72 = vector.broadcast %71 : vector<16x1xf32> to vector<16x32xf32>
    %73 = arith.mulf %68, %72 : vector<16x32xf32>
    %74 = vector.broadcast %8 : vector<1x32xf32> to vector<16x32xf32>
    %75 = arith.mulf %73, %74 : vector<16x32xf32>
    %76 = vector.broadcast %9 : vector<1x32xf32> to vector<16x32xf32>
    %77 = arith.addf %75, %76 : vector<16x32xf32>
    %78 = arith.truncf %77 : vector<16x32xf32> to vector<16x32xbf16>
    %c0_24 = arith.constant 0 : index
    %c0_25 = arith.constant 0 : index
    %c0_26 = arith.constant 0 : index
    %79 = vector.load %arg6[%c0_24, %c0_25, %c0_26] : memref<1x32x64xbf16, #tpu.memory_space<vmem>>, vector<1x32x64xbf16>
    %80 = vector.shape_cast %79 : vector<1x32x64xbf16> to vector<32x64xbf16>
    %cst_27 = arith.constant dense<0.000000e+00> : vector<16x64xf32>
    %81 = tpu.matmul %78, %80, %cst_27 {dimension_numbers = #tpu.dot_dimension_numbers<[1], [0], [0], [1], [0, 0, 1, 1], [], []>} : vector<16x32xbf16>, vector<32x64xbf16>, vector<16x64xf32> -> vector<16x64xf32>
    %82 = vector.broadcast %10 : vector<1x64xf32> to vector<16x64xf32>
    %83 = arith.addf %81, %82 : vector<16x64xf32>
    %cst_28 = arith.constant 5.000000e-01 : f32
    %84 = vector.broadcast %cst_28 : f32 to vector<16x64xf32>
    %85 = arith.mulf %84, %83 : vector<16x64xf32>
    %cst_29 = arith.constant 4.471500e-02 : f32
    %86 = vector.broadcast %cst_29 : f32 to vector<16x64xf32>
    %87 = arith.mulf %86, %83 : vector<16x64xf32>
    %88 = arith.mulf %87, %83 : vector<16x64xf32>
    %89 = arith.mulf %88, %83 : vector<16x64xf32>
    %90 = arith.addf %83, %89 : vector<16x64xf32>
    %cst_30 = arith.constant 0.797884583 : f32
    %91 = vector.broadcast %cst_30 : f32 to vector<16x64xf32>
    %92 = arith.mulf %91, %90 : vector<16x64xf32>
    %93 = math.tanh %92 : vector<16x64xf32>
    %cst_31 = arith.constant 1.000000e+00 : f32
    %94 = vector.broadcast %cst_31 : f32 to vector<16x64xf32>
    %95 = arith.addf %94, %93 : vector<16x64xf32>
    %96 = arith.mulf %85, %95 : vector<16x64xf32>
    %97 = arith.truncf %96 : vector<16x64xf32> to vector<16x64xbf16>
    %c0_32 = arith.constant 0 : index
    %c0_33 = arith.constant 0 : index
    %c0_34 = arith.constant 0 : index
    %98 = vector.load %arg7[%c0_32, %c0_33, %c0_34] : memref<1x64x32xbf16, #tpu.memory_space<vmem>>, vector<1x64x32xbf16>
    %99 = vector.shape_cast %98 : vector<1x64x32xbf16> to vector<64x32xbf16>
    %cst_35 = arith.constant dense<0.000000e+00> : vector<16x32xf32>
    %100 = tpu.matmul %97, %99, %cst_35 {dimension_numbers = #tpu.dot_dimension_numbers<[1], [0], [0], [1], [0, 0, 1, 1], [], []>} : vector<16x64xbf16>, vector<64x32xbf16>, vector<16x32xf32> -> vector<16x32xf32>
    %101 = vector.broadcast %11 : vector<1x32xf32> to vector<16x32xf32>
    %102 = arith.addf %100, %101 : vector<16x32xf32>
    %103 = arith.addf %77, %102 : vector<16x32xf32>
    %cst_36 = arith.constant dense<0.000000e+00> : vector<16xf32>
    %104 = vector.multi_reduction <add>, %103, %cst_36 [1] : vector<16x32xf32> to vector<16xf32>
    %105 = vector.shape_cast %104 : vector<16xf32> to vector<16x1xf32>
    %cst_37 = arith.constant 3.200000e+01 : f32
    %106 = vector.broadcast %cst_37 : f32 to vector<16x1xf32>
    %107 = arith.divf %105, %106 : vector<16x1xf32>
    %108 = vector.broadcast %107 : vector<16x1xf32> to vector<16x32xf32>
    %109 = arith.subf %103, %108 : vector<16x32xf32>
    %110 = arith.mulf %109, %109 : vector<16x32xf32>
    %cst_38 = arith.constant dense<0.000000e+00> : vector<16xf32>
    %111 = vector.multi_reduction <add>, %110, %cst_38 [1] : vector<16x32xf32> to vector<16xf32>
    %112 = vector.shape_cast %111 : vector<16xf32> to vector<16x1xf32>
    %cst_39 = arith.constant 3.200000e+01 : f32
    %113 = vector.broadcast %cst_39 : f32 to vector<16x1xf32>
    %114 = arith.divf %112, %113 : vector<16x1xf32>
    %115 = vector.broadcast %107 : vector<16x1xf32> to vector<16x32xf32>
    %116 = arith.subf %103, %115 : vector<16x32xf32>
    %cst_40 = arith.constant 9.99999996E-13 : f32
    %117 = vector.broadcast %cst_40 : f32 to vector<16x1xf32>
    %118 = arith.addf %114, %117 : vector<16x1xf32>
    %119 = math.rsqrt %118 : vector<16x1xf32>
    %120 = vector.broadcast %119 : vector<16x1xf32> to vector<16x32xf32>
    %121 = arith.mulf %116, %120 : vector<16x32xf32>
    %122 = vector.broadcast %12 : vector<1x32xf32> to vector<16x32xf32>
    %123 = arith.mulf %121, %122 : vector<16x32xf32>
    %124 = vector.broadcast %13 : vector<1x32xf32> to vector<16x32xf32>
    %125 = arith.addf %123, %124 : vector<16x32xf32>
    %c0_41 = arith.constant 0 : index
    %c0_42 = arith.constant 0 : index
    %126 = vector.load %arg12[%c0_41, %c0_42] : memref<16x32xf32, #tpu.memory_space<vmem>>, vector<16x32xf32>
    tpu.vector_store %arg12[%c0_41, %c0_42], %125 {strides = array<i32>} : memref<16x32xf32, #tpu.memory_space<vmem>>, vector<16x32xf32>,
    %c1_i32 = arith.constant 1 : i32
    %127 = arith.cmpi eq, %arg1, %c1_i32 : i32
    %128 = arith.extui %127 : i1 to i32
    %c0_i32_43 = arith.constant 0 : i32
    %129 = arith.cmpi ne, %128, %c0_i32_43 : i32
    scf.if %129 {
      %130 = vector.extract_strided_slice %125 {offsets = [0, 0], sizes = [1, 32], strides = [1, 1]} : vector<16x32xf32> to vector<1x32xf32>
      %131 = vector.extract_strided_slice %125 {offsets = [8, 0], sizes = [1, 32], strides = [1, 1]} : vector<16x32xf32> to vector<1x32xf32>
      %132 = tpu.concatenate %130, %131 in 0 : vector<1x32xf32>, vector<1x32xf32> -> vector<2x32xf32>
      %c0_44 = arith.constant 0 : index
      %c0_45 = arith.constant 0 : index
      %133 = vector.load %arg10[%c0_44, %c0_45] : memref<32x160xbf16, #tpu.memory_space<vmem>>, vector<32x128xbf16>
      %c0_46 = arith.constant 0 : index
      %c128 = arith.constant 128 : index
      %134 = vector.load %arg10[%c0_46, %c128] : memref<32x160xbf16, #tpu.memory_space<vmem>>, vector<32x32xbf16>
      %c2 = arith.constant 2 : index
      %c0_47 = arith.constant 0 : index
      %135 = vector.load %arg9[%c2, %c0_47] : memref<4x128xf32, #tpu.memory_space<vmem>>, vector<1x32xf32>
      %c3 = arith.constant 3 : index
      %c0_48 = arith.constant 0 : index
      %136 = vector.load %arg9[%c3, %c0_48] : memref<4x128xf32, #tpu.memory_space<vmem>>, vector<1x128xf32>
      %137 = arith.truncf %132 : vector<2x32xf32> to vector<2x32xbf16>
      %cst_49 = arith.constant dense<0.000000e+00> : vector<2x32xf32>
      %138 = tpu.matmul %137, %134, %cst_49 {dimension_numbers = #tpu.dot_dimension_numbers<[1], [0], [0], [1], [0, 0, 1, 1], [], []>} : vector<2x32xbf16>, vector<32x32xbf16>, vector<2x32xf32> -> vector<2x32xf32>
      %139 = vector.broadcast %135 : vector<1x32xf32> to vector<2x32xf32>
      %140 = arith.addf %138, %139 : vector<2x32xf32>
      %141 = math.tanh %140 : vector<2x32xf32>
      %142 = arith.truncf %141 : vector<2x32xf32> to vector<2x32xbf16>
      %cst_50 = arith.constant dense<0.000000e+00> : vector<2x128xf32>
      %143 = tpu.matmul %142, %133, %cst_50 {dimension_numbers = #tpu.dot_dimension_numbers<[1], [0], [0], [1], [0, 0, 1, 1], [], []>} : vector<2x32xbf16>, vector<32x128xbf16>, vector<2x128xf32> -> vector<2x128xf32>
      %144 = vector.broadcast %136 : vector<1x128xf32> to vector<2x128xf32>
      %145 = arith.addf %143, %144 : vector<2x128xf32>
      %c0_51 = arith.constant 0 : index
      %c0_52 = arith.constant 0 : index
      %c0_53 = arith.constant 0 : index
      %146 = vector.load %arg11[%c0_51, %c0_52, %c0_53] : memref<1x2x128xf32, #tpu.memory_space<vmem>>, vector<1x2x128xf32>
      %147 = vector.shape_cast %146 : vector<1x2x128xf32> to vector<2x128xf32>
      %148 = vector.shape_cast %145 : vector<2x128xf32> to vector<1x2x128xf32>
      tpu.vector_store %arg11[%c0_51, %c0_52, %c0_53], %148 {strides = array<i32>} : memref<1x2x128xf32, #tpu.memory_space<vmem>>, vector<1x2x128xf32>,
    } else {
    }
    return
  }
  func.func @transform_0(%arg0: i32, %arg1: i32) -> (i32, i32, i32) {
    %c0_i32 = arith.constant 0 : i32
    %c0_i32_0 = arith.constant 0 : i32
    %c0_i32_1 = arith.constant 0 : i32
    return %arg0, %c0_i32, %c0_i32_0 : i32, i32, i32
  }
  func.func @transform_1(%arg0: i32, %arg1: i32) -> (i32, i32, i32) {
    %c0_i32 = arith.constant 0 : i32
    %c0_i32_0 = arith.constant 0 : i32
    %c0_i32_1 = arith.constant 0 : i32
    return %arg0, %c0_i32, %c0_i32_0 : i32, i32, i32
  }
  func.func @transform_2(%arg0: i32, %arg1: i32) -> (i32, i32, i32) {
    %c0_i32 = arith.constant 0 : i32
    %c0_i32_0 = arith.constant 0 : i32
    %c0_i32_1 = arith.constant 0 : i32
    return %arg1, %c0_i32, %c0_i32_0 : i32, i32, i32
  }
  func.func @transform_3(%arg0: i32, %arg1: i32) -> (i32, i32, i32) {
    %c0_i32 = arith.constant 0 : i32
    %c0_i32_0 = arith.constant 0 : i32
    %c0_i32_1 = arith.constant 0 : i32
    return %arg1, %c0_i32, %c0_i32_0 : i32, i32, i32
  }
  func.func @transform_4(%arg0: i32, %arg1: i32) -> (i32, i32, i32) {
    %c0_i32 = arith.constant 0 : i32
    %c0_i32_0 = arith.constant 0 : i32
    %c0_i32_1 = arith.constant 0 : i32
    return %arg1, %c0_i32, %c0_i32_0 : i32, i32, i32
  }
  func.func @transform_5(%arg0: i32, %arg1: i32) -> (i32, i32, i32) {
    %c0_i32 = arith.constant 0 : i32
    %c0_i32_0 = arith.constant 0 : i32
    %c0_i32_1 = arith.constant 0 : i32
    return %arg1, %c0_i32, %c0_i32_0 : i32, i32, i32
  }
  func.func @transform_6(%arg0: i32, %arg1: i32) -> (i32, i32, i32) {
    %c0_i32 = arith.constant 0 : i32
    %c0_i32_0 = arith.constant 0 : i32
    %c0_i32_1 = arith.constant 0 : i32
    return %arg1, %c0_i32, %c0_i32_0 : i32, i32, i32
  }
  func.func @transform_7(%arg0: i32, %arg1: i32) -> (i32, i32) {
    %c0_i32 = arith.constant 0 : i32
    %c0_i32_0 = arith.constant 0 : i32
    %c0_i32_1 = arith.constant 0 : i32
    return %c0_i32, %c0_i32_0 : i32, i32
  }
  func.func @transform_8(%arg0: i32, %arg1: i32) -> (i32, i32) {
    %c0_i32 = arith.constant 0 : i32
    %c0_i32_0 = arith.constant 0 : i32
    %c0_i32_1 = arith.constant 0 : i32
    return %c0_i32, %c0_i32_0 : i32, i32
  }
  func.func @transform_9(%arg0: i32, %arg1: i32) -> (i32, i32, i32) {
    %c0_i32 = arith.constant 0 : i32
    %c0_i32_0 = arith.constant 0 : i32
    %c0_i32_1 = arith.constant 0 : i32
    return %arg0, %c0_i32, %c0_i32_0 : i32, i32, i32
  }
}

</mosaic_0001>

<bundles_post_ra>
// kernel: bert_classifier_forward.1
= control target key start
LH: loop header
LB: loop body
LE: loop exit
PB: predicated region body
PF: predicated region fallthrough
CT: control target
= control target key end

     0   :  { %14 = vsyncpa [#allocation4], 0  ;;  %s1711_s30 = smov 0   ;;  %s1713_s10 = smov 0   ;;  %s1942_s0 = inlined_call_operand.vmem [shape: f32[1,16,32], index: 0, kind: input, shape index: {}]   ;;  %s1943_s1 = inlined_call_operand.vmem [shape: f32[1,32,32], index: 1, kind: input, shape index: {}]   ;;  %s1944_s2 = inlined_call_operand.vmem [shape: bf16[2,32,96], index: 2, kind: input, shape index: {}]   ;;  %s1945_s3 = inlined_call_operand.vmem [shape: bf16[2,32,32], index: 3, kind: input, shape index: {}]   ;;  %s1946_s4 = inlined_call_operand.vmem [shape: bf16[2,32,64], index: 4, kind: input, shape index: {}]   ;;  %s1947_s5 = inlined_call_operand.vmem [shape: bf16[2,64,32], index: 5, kind: input, shape index: {}]   ;;  %s1948_s6 = inlined_call_operand.vmem [shape: f32[2,8,96], index: 6, kind: input, shape index: {}]   ;;  %s1949_s7 = inlined_call_operand.vmem [shape: f32[4,128], index: 7, kind: input, shape index: {}]   ;;  %s1950_s8 = inlined_call_operand.vmem [shape: bf16[32,160], index: 8, kind: input, shape index: {}]   ;;  %s1951_s9 = inlined_call_operand.hbm [shape: f32[1,2,128], index: 9, kind: output, shape index: {}]  }
   0x1   :  { %s1715_s11 = smov 0  }
   0x2 LB: > { %s29_s13 = sadd.s32 1, %s1646_s10  ;;  %p1360_p1 = scmp.ge.s32.totalorder %s1650_s11, 1  ;;  %s1650_s11 = sphi %s1715_s11, %s20_s11   ;;  %s1646_s10 = sphi %s1713_s10, %s1955_s10   ;;  %s1642_s30 = sphi %s1711_s30, %s1954_s30  }
   0x3   : > { %p30_p0 = scmp.ge.s32.totalorder %s29_s13, 2  ;;  %p359_p2 = scmp.lt.s32.totalorder %s1650_s11, 3 }
   0x5   : > { %s1957_s13 = smov (%p30_p0, %s29_s13), 0  ;;  %p360_p3 = pnand %p1360_p1, %p359_p2 }
   0x6   : > { %p429_p4 = scmp.lt.s32.totalorder (!%p360_p3), %s1642_s30, 1  ;;  %p1370_p5 = scmp.ne.s32.totalorder (!%p360_p3), %s1642_s30, 0 }
   0x7   : > { %363 = sbr.rel (%p360_p3) target bundleno = 3458 (0xd82), region = 56 }
   0xe   : > { %s430_s14 = scalar_select %p429_p4, %s1642_s30, 1 }
   0xf   : > { %457 = sbr.rel (%p1370_p5) target bundleno = 334 (0x14e), region = 60  ;;  %v458_v0 = vld [vmem:[%s1942_s0] sm:$0xff] (!%p1370_p5)  ;;  %vm462_vm0 = vcmask (!%p1370_p5), 261120   ;;  %v459_v1 = vld [vmem:[%s1942_s0 + $0x8] sm:$0xff] (!%p1370_p5) }
  0x10   : > { %s1404_s15 = sshll.u32 %s430_s14, 4  ;;  %s1407_s16 = sshll.u32 %s430_s14, 5  ;;  %v463_v2 = vsel (!%p1370_p5), %vm462_vm0, %v458_v0, 0.0  ;;  %v466_v3 = vsel (!%p1370_p5), %vm462_vm0, %v459_v1, 0.0  ;;  %v1371_v21 = vld [vmem:[%s1949_s7] ss:$0 sm:$0xff] (!%p1370_p5) }
  0x11   : > { %s1737_s19 = scalar_lea.vmem %s1944_s2, %s1404_s15  ;;  %s1742_s22 = scalar_lea.vmem %s1945_s3, %s1404_s15  ;;  %464 = vadd.xlane.f32.xlu0 (!%p1370_p5), %v463_v2  ;;  %v1372_v23 = vld [vmem:[%s1949_s7 + $0x1] ss:$0 sm:$0xff] (!%p1370_p5) }
  0x12   : > { %s1747_s25 = scalar_lea.vmem %s1946_s4, %s1404_s15  ;;  %s1752_s28 = scalar_lea.vmem %s1947_s5, %s1407_s16 }
  0x13   : > { %s1369_s29 = sshll.u32 %s430_s14, 3 }
  0x14   : > { %s1757_s18 = scalar_lea.vmem %s1948_s6, %s1369_s29 }
  0x15   : > { %467 = vadd.xlane.f32.xlu0 (!%p1370_p5), %v466_v3 }
  0x9e   : > { %v465_v4 = vpop.xlane.xlu0 %464 }
  0x9f   : > { %v470_v5 = vmul.f32 0.03125, %v465_v4 }
  0xa1   : > { %v472_v6 = vsub.f32 %v458_v0, %v470_v5 }
  0xa2   : > { %v468_v7 = vpop.xlane.xlu0 %467 }
  0xa3   : > { %v471_v8 = vmul.f32 0.03125, %v468_v7  ;;  %v474_v9 = vmul.f32 %v472_v6, %v472_v6 }
  0xa5   : > { %v473_v10 = vsub.f32 %v459_v1, %v471_v8  ;;  %v476_v11 = vsel %vm462_vm0, %v474_v9, 0.0 }
  0xa6   : > { %477 = vadd.xlane.f32.xlu1 %v476_v11 }
  0xa7   : > { %v475_v12 = vmul.f32 %v473_v10, %v473_v10 }
  0xa9   : > { %v479_v13 = vsel %vm462_vm0, %v475_v12, 0.0 }
  0xaa   : > { %480 = vadd.xlane.f32.xlu1 %v479_v13 }
 0x133   : > { %v478_v14 = vpop.xlane.xlu1 %477 }
 0x134   : > { %v482_v15 = vmul.f32 0.03125, %v478_v14 }
 0x136   : > { %v484_v16 = vadd.f32 1e-12, %v482_v15 }
 0x137   : > { %v481_v17 = vpop.xlane.xlu1 %480 }
 0x138   : > { %1545 = vrsqrt.f32 %v484_v16  ;;  %v483_v18 = vmul.f32 0.03125, %v481_v17 }
 0x13a   : > { %v485_v19 = vadd.f32 1e-12, %v483_v18 }
 0x13c   : > { %1547 = vrsqrt.f32 %v485_v19 }
 0x142   : > { %v1546_v20 = vpop.eup %1545 }
 0x143   : > { %v488_v22 = vmul.f32 %v1546_v20, %v472_v6 }
 0x145   : > { %v494_v24 = vmul.f32 %v1371_v21, %v488_v22 }
 0x146   : > { %v1548_v25 = vpop.eup %1547 }
 0x147   : > { %v500_v26 = vadd.f32 %v1372_v23, %v494_v24  ;;  %v489_v27 = vmul.f32 %v1548_v25, %v473_v10 }
 0x149   : > { %502 = vst.msk [vmem:[#allocation2] sm:$0xff] %vm462_vm0, %v500_v26  ;;  %v495_v28 = vmul.f32 %v1371_v21, %v489_v27 }
 0x14b   : > { %v501_v29 = vadd.f32 %v1372_v23, %v495_v28 }
 0x14d   : > { %503 = vst.msk [vmem:[#allocation2 + $0x8] sm:$0xff] %vm462_vm0, %v501_v29 }
 0x14e PF: > { %v1554_v30 = vld [vmem:[%s1737_s19] sm:$0xff]   ;;  %v1652_v31 = vmov 0.0   ;;  %v1555_v32 = vld [vmem:[%s1737_s19 + $0x8] sm:$0xff]   ;;  %vm1653_vm1 = vmmov 0   ;;  %vm528_vm2 = vcmask 261120   ;;  %v512_v36 = vlaneseq  ;;  %s1654_s19 = smov 112  }
 0x14f   : > { %1436 = vmatprep.subr.bf16.mxu1 %v1652_v31  ;;  %1440 = vmatprep.mubr.msk.bf16.mxu1 %vm1653_vm1, %v1652_v31  ;;  %v1795_v39 = vld [vmem:[%s1757_s18] sm:$0xff]  ;;  %vm585_vm3 = vcmask 130048   ;;  %s1655_s26 = smov 96   ;;  %v580_v56 = vld [vmem:[%s1943_s1 + $0x18] sm:$0xff]  ;;  %v578_v57 = vld [vmem:[%s1943_s1 + $0x8] sm:$0xff]  ;;  %s1656_s12 = smov 64  }
 0x150   : > { %1437 = vmatpush3.bf16.msra.mxu1 %v1554_v30  ;;  %v1783_v33 = vld [vmem:[#allocation2] sm:$0xff]  ;;  %v1791_v37 = vshrl.u32 %v512_v36, 7  ;;  %v579_v60 = vld [vmem:[%s1943_s1 + $0x10] sm:$0xff]  ;;  %s1657_s14 = smov 16   ;;  %vm990_vm4 = vcmask 523264   ;;  %p1391_p6 = scmp.ne.s32.totalorder %s1642_s30, 1 }
 0x151   : > { %1438 = vmatprep.subr.bf16.mxu1 %v1652_v31  ;;  %v577_v53 = vld [vmem:[%s1943_s1] sm:$0xff]  ;;  %vm1659_vm5 = vmmov (!%p1391_p6), 0   ;;  %vm1084_vm6 = vcmask (!%p1391_p6), 1040384  }
 0x152   : > { %v514_v38 = vsub.s32 0, %v1791_v37 }
 0x154   : > { %v1785_v34 = vld [vmem:[#allocation2 + $0x8] sm:$0xff]  ;;  %1439 = vmatpush3.bf16.msra.mxu1 %v1555_v32  ;;  %v515_v40 = vrot.slane %v1795_v39, %v514_v38 }
 0x155   : > { %v507_v35 = vpack.c.bf16 %v1785_v34, %v1783_v33 }
 0x157   : > { %1441 = vmatmul.mubr.msk.bf16.vlgmr.msra.gmra.mrb[0].mxu1 %vm528_vm2, %v507_v35 }
 0x22a   : > { %v566_v41 = vpop.f32.mrb[0].mxu1 }
 0x22b   : > { %v1442_v42 = vpop.f32.mrb[1].mxu1  ;;  %v567_v44 = vadd.f32 %v566_v41, %v515_v40 }
 0x22c   : > { %v569_v43 = vpop.f32.mrb[2].mxu1 }
 0x22d   : > { %v570_v45 = vadd.f32 %v569_v43, %v515_v40  ;;  %v1443_v46 = vpop.f32.mrb[3].mxu1 }
 0x22e   : > { %v1556_v46 = vld [vmem:[%s1742_s22] sm:$0xff]  }
 0x22f   : > { %v1798_v47 = vpack.c.bf16 %v570_v45, %v567_v44 }
 0x231   : > { %575 = vrot.lane.b32.xlu0 %v1798_v47, %s1654_s19  ;;  %1448 = vmatprep.mubr.msk.bf16.mxu1 %vm585_vm3, %v1798_v47 }
 0x235   : > { %581 = vrot.lane.b32.xlu0 %v1798_v47, %s1655_s26 }
 0x2a3   : > { %v576_v48 = vpop.permute.xlu0 %575 }
 0x2a4   : > { %583 = vrot.lane.b32.xlu1 %v576_v48, %s1655_s26 }
 0x2a7   : > { %v582_v49 = vpop.permute.xlu0 %581 }
 0x2a8   : > { %v593_v50 = vsel %vm585_vm3, %v582_v49, 0  ;;  %1504 = vmatprep.subr.msk.bf16.mxu1 %vm585_vm3, %v582_v49 }
 0x2a9   : > { %1445 = vmatpush3.bf16.xpose.msra.mxu1 %v593_v50 }
 0x316   : > { %v584_v51 = vpop.permute.xlu1 %583 }
 0x317   : > { %v596_v52 = vsel %vm585_vm3, %v584_v51, 0  ;;  %1505 = vmatprep.subr.msk.bf16.mxu1 %vm585_vm3, %v584_v51 }
 0x318   : > { %1447 = vmatpush3.bf16.xpose.msra.mxu1 %v596_v52 }
 0x319   : > { %1468 = vmatprep.subr.bf16.mxu1 %v1652_v31 }
 0x31f   : > { %1449 = vmatmul.mubr.msk.bf16.vlgmr.msra.gmra.mrb[4].mxu1 %vm585_vm3, %v576_v48 }
 0x320   : > { %1472 = vmatprep.mubr.msk.bf16.mxu1 %vm1653_vm1, %v1652_v31 }
 0x3f2   : > { %v1450_v54 = vpop.f32.mrb[4].mxu1 }
 0x3f3   : > { %v632_v55 = vpop.f32.mrb[5].mxu1  ;;  %v641_v1 = vadd.f32 %v1450_v54, %v579_v60 }
 0x3f4   : > { %v633_v58 = vadd.f32 %v632_v55, %v577_v53  ;;  %v1451_v59 = vpop.f32.mrb[6].mxu1 }
 0x3f5   : > { %v635_v61 = vpop.f32.mrb[7].mxu1  ;;  %v644_v62 = vadd.f32 %v1451_v59, %v580_v56  ;;  %v653_v4 = vsel %vm528_vm2, %v641_v1, -inf  ;;  %v771_v59 = vsub.s32 1, %v1791_v37 }
 0x3f6   : > { %v636_v63 = vadd.f32 %v635_v61, %v578_v57  ;;  %v647_v0 = vsel %vm528_vm2, %v633_v58, -inf }
 0x3f7   : > { %648 = vmax.xlane.f32.xlu1 %v647_v0  ;;  %v656_v3 = vsel %vm528_vm2, %v644_v62, -inf  ;;  %v772_v60 = vrot.slane %v1795_v39, %v771_v59 }
 0x3f8   : > { %v650_v2 = vsel %vm528_vm2, %v636_v63, -inf }
 0x3f9   : > { %651 = vmax.xlane.f32.xlu0 %v650_v2 }
 0x3fb   : > { %657 = vmax.xlane.f32.xlu1 %v656_v3 }
 0x3fd   : > { %654 = vmax.xlane.f32.xlu0 %v653_v4 }
 0x484   : > { %v649_v5 = vpop.xlane.xlu1 %648 }
 0x485   : > { %v659_v9 = vsub.f32 %v633_v58, %v649_v5 }
 0x486   : > { %v652_v6 = vpop.xlane.xlu0 %651 }
 0x487   : > { %v660_v7 = vsub.f32 %v636_v63, %v652_v6  ;;  %v663_v15 = vmul.f32 1.442695, %v659_v9 }
 0x488   : > { %v658_v8 = vpop.xlane.xlu1 %657 }
 0x489   : > { %v662_v10 = vsub.f32 %v644_v62, %v658_v8  ;;  %v665_v11 = vmul.f32 1.442695, %v660_v7 }
 0x48a   : > { %v655_v12 = vpop.xlane.xlu0 %654 }
 0x48b   : > { %v669_v13 = vmul.f32 1.442695, %v662_v10  ;;  %v661_v14 = vsub.f32 %v641_v1, %v655_v12 }
 0x48d   : > { %1564 = vpow2.f32 %v669_v13  ;;  %v667_v16 = vmul.f32 1.442695, %v661_v14 }
 0x48e   : > { %1566 = vpow2.f32 %v665_v11 }
 0x48f   : > { %1568 = vpow2.f32 %v667_v16  ;;  %v1559_v16 = vld [vmem:[%s1747_s25 + $0x8] sm:$0xff]  }
 0x490   : > { %1570 = vpow2.f32 %v663_v15 }
 0x497   : > { %v1565_v17 = vpop.eup %1564 }
 0x498   : > { %v1567_v18 = vpop.eup %1566  ;;  %v680_v19 = vsel %vm528_vm2, %v1565_v17, 0.0 }
 0x499   : > { %v1569_v20 = vpop.eup %1568  ;;  %681 = vadd.xlane.f32.xlu1 %v680_v19  ;;  %v674_v23 = vsel %vm528_vm2, %v1567_v18, 0.0 }
 0x49a   : > { %v677_v21 = vsel %vm528_vm2, %v1569_v20, 0.0  ;;  %v1571_v22 = vpop.eup %1570 }
 0x49b   : > { %678 = vadd.xlane.f32.xlu0 %v677_v21  ;;  %v671_v24 = vsel %vm528_vm2, %v1571_v22, 0.0 }
 0x49d   : > { %675 = vadd.xlane.f32.xlu1 %v674_v23  ;;  %v860_v23 = vsub.s32 2, %v1791_v37 }
 0x49f   : > { %672 = vadd.xlane.f32.xlu0 %v671_v24 }
 0x4ae   : > { %695 = vrot.lane.b32.xlu1 %v576_v48, %s1656_s12 }
 0x4b5   : > { %693 = vrot.lane.b32.xlu0 %v1798_v47, %s1656_s12  ;;  %v1557_v47 = vld [vmem:[%s1742_s22 + $0x8] sm:$0xff]  }
 0x526   : > { %v682_v25 = vpop.xlane.xlu1 %681 }
 0x528   : > { %v679_v26 = vpop.xlane.xlu0 %678 }
 0x529   : > { %1572 = vrcp.f32 %v679_v26 }
 0x52a   : > { %v676_v27 = vpop.xlane.xlu1 %675 }
 0x52b   : > { %1574 = vrcp.f32 %v676_v27  ;;  %v866_v27 = vsub.s32 3, %v1791_v37 }
 0x52c   : > { %1576 = vrcp.f32 %v682_v25  ;;  %v673_v28 = vpop.xlane.xlu0 %672  ;;  %v861_v25 = vrot.slane %v1795_v39, %v860_v23 }
 0x52d   : > { %1578 = vrcp.f32 %v673_v28 }
 0x52e   : > { %v696_v30 = vpop.permute.xlu1 %695 }
 0x530   : > { %v694_v29 = vpop.permute.xlu0 %693 }
 0x531   : > { %1452 = vmatprep.subr.bf16.mxu0 %v694_v29 }
 0x532   : > { %1453 = vmatpush3.bf16.msra.mxu0 %v694_v29 }
 0x533   : > { %1454 = vmatprep.subr.bf16.mxu0 %v696_v30  ;;  %v1573_v32 = vpop.eup %1572 }
 0x534   : > { %v689_v40 = vmul.f32 %v1573_v32, %v1569_v20  ;;  %v867_v32 = vrot.slane %v1795_v39, %v866_v27 }
 0x535   : > { %v1575_v35 = vpop.eup %1574 }
 0x536   : > { %v1577_v36 = vpop.eup %1576  ;;  %1455 = vmatpush3.bf16.msra.mxu0 %v696_v30  ;;  %v688_v42 = vmul.f32 %v1575_v35, %v1567_v18 }
 0x537   : > { %v1579_v38 = vpop.eup %1578  ;;  %1460 = vmatprep.subr.bf16.mxu0 %v1652_v31  ;;  %v690_v43 = vmul.f32 %v1577_v36, %v1565_v17 }
 0x538   : > { %v687_v41 = vmul.f32 %v1579_v38, %v1571_v22 }
 0x539   : > { %v692_v45 = vpack.c.bf16 %v690_v43, %v689_v40  ;;  %v1562_v43 = vld [vmem:[%s1752_s28 + $0x10] sm:$0xff]  }
 0x53a   : > { %v691_v44 = vpack.c.bf16 %v688_v42, %v687_v41  ;;  %v1560_v41 = vld [vmem:[%s1752_s28] sm:$0xff]   ;;  %v1561_v42 = vld [vmem:[%s1752_s28 + $0x8] sm:$0xff]  }
 0x53c   : > { %1456 = vmatprep.mubr.msk.bf16.mxu0 %vm528_vm2, %v691_v44  ;;  %v1563_v44 = vld [vmem:[%s1752_s28 + $0x18] sm:$0xff]  }
 0x53d   : > { %1457 = vmatmul.mubr.msk.bf16.vlgmr.msra.gmra.mrb[0].mxu0 %vm528_vm2, %v692_v45  ;;  %v877_v45 = vsub.s32 4, %v1791_v37 }
 0x53e   : > { %1464 = vmatprep.mubr.msk.bf16.mxu0 %vm1653_vm1, %v1652_v31  ;;  %1461 = vmatpush3.bf16.msra.mxu0 %v1556_v46 }
 0x53f   : > { %1462 = vmatprep.subr.bf16.mxu0 %v1652_v31  ;;  %v878_v46 = vrot.slane %v1795_v39, %v877_v45 }
 0x542   : > { %1463 = vmatpush3.bf16.msra.mxu0 %v1557_v47 }
 0x543   : > { %1476 = vmatprep.subr.bf16.mxu0 %v1652_v31 }
 0x610   : > { %v1458_v48 = vpop.f32.mrb[0].mxu0 }
 0x611   : > { %v739_v49 = vpop.f32.mrb[1].mxu0 }
 0x612   : > { %v1459_v50 = vpop.f32.mrb[2].mxu0 }
 0x613   : > { %v1549_v51 = vpack.i.bf16 %v1459_v50, %v1458_v48  ;;  %v742_v52 = vpop.f32.mrb[3].mxu0 }
 0x615   : > { %1550 = vrot.lane.b32.xlu1 %v1549_v51, %s1657_s14 }
 0x687   : > { %v1551_v53 = vpop.permute.xlu1 %1550 }
 0x688   : > { %v1553_v54 = vunpack.i.h.bf16 %v1551_v53  ;;  %v1552_v55 = vunpack.i.l.bf16 %v1551_v53 }
 0x68a   : > { %v762_v56 = vsel %vm585_vm3, %v739_v49, %v1552_v55  ;;  %v763_v57 = vsel %vm585_vm3, %v742_v52, %v1553_v54 }
 0x68b   : > { %v764_v58 = vpack.c.bf16 %v763_v57, %v762_v56 }
 0x68d   : > { %1465 = vmatmul.mubr.msk.bf16.vlgmr.msra.gmra.mrb[4].mxu0 %vm528_vm2, %v764_v58 }
 0x68e   : > { %1484 = vmatprep.mubr.msk.bf16.mxu0 %vm1653_vm1, %v1652_v31  ;;  %1477 = vmatpush3.bf16.msra.mxu0 %v1560_v41 }
 0x68f   : > { %1478 = vmatprep.subr.bf16.mxu0 %v1652_v31 }
 0x692   : > { %1479 = vmatpush3.bf16.msra.mxu0 %v1561_v42 }
 0x693   : > { %1480 = vmatprep.subr.bf16.mxu0 %v1652_v31 }
 0x696   : > { %1481 = vmatpush3.bf16.msra.mxu0 %v1562_v43 }
 0x697   : > { %1482 = vmatprep.subr.bf16.mxu0 %v1652_v31 }
 0x69a   : > { %1483 = vmatpush3.bf16.msra.mxu0 %v1563_v44 }
 0x760   : > { %v822_v61 = vpop.f32.mrb[4].mxu0 }
 0x761   : > { %v823_v62 = vadd.f32 %v822_v61, %v772_v60  ;;  %v1466_v63 = vpop.f32.mrb[5].mxu0 }
 0x762   : > { %v825_v0 = vpop.f32.mrb[6].mxu0 }
 0x763   : > { %v826_v1 = vadd.f32 %v825_v0, %v772_v60  ;;  %v1467_v2 = vpop.f32.mrb[7].mxu0  ;;  %v829_v3 = vadd.f32 %v823_v62, %v1783_v33 }
 0x765   : > { %v831_v4 = vsel %vm528_vm2, %v829_v3, 0.0  ;;  %v830_v5 = vadd.f32 %v826_v1, %v1785_v34  ;;  %v1558_v34 = vld [vmem:[%s1747_s25] sm:$0xff]  }
 0x766   : > { %832 = vadd.xlane.f32.xlu0 %v831_v4  ;;  %1469 = vmatpush3.bf16.msra.mxu1 %v1558_v34 }
 0x767   : > { %v834_v6 = vsel %vm528_vm2, %v830_v5, 0.0  ;;  %1470 = vmatprep.subr.bf16.mxu1 %v1652_v31 }
 0x768   : > { %835 = vadd.xlane.f32.xlu1 %v834_v6 }
 0x76a   : > { %1471 = vmatpush3.bf16.msra.mxu1 %v1559_v16 }
 0x7f3   : > { %v833_v7 = vpop.xlane.xlu0 %832 }
 0x7f4   : > { %v838_v8 = vmul.f32 0.03125, %v833_v7  ;;  %v964_v7 = vsub.s32 5, %v1791_v37 }
 0x7f5   : > { %v836_v9 = vpop.xlane.xlu1 %835 }
 0x7f6   : > { %v840_v10 = vsub.f32 %v829_v3, %v838_v8  ;;  %v839_v11 = vmul.f32 0.03125, %v836_v9  ;;  %v965_v8 = vrot.slane %v1795_v39, %v964_v7 }
 0x7f8   : > { %v841_v12 = vsub.f32 %v830_v5, %v839_v11  ;;  %v842_v13 = vmul.f32 %v840_v10, %v840_v10 }
 0x7fa   : > { %v844_v14 = vsel %vm528_vm2, %v842_v13, 0.0  ;;  %v843_v33 = vmul.f32 %v841_v12, %v841_v12 }
 0x7fb   : > { %845 = vadd.xlane.f32.xlu0 %v844_v14 }
 0x7fc   : > { %v847_v15 = vsel %vm528_vm2, %v843_v33, 0.0 }
 0x7ff   : > { %848 = vadd.xlane.f32.xlu0 %v847_v15 }
 0x888   : > { %v846_v17 = vpop.xlane.xlu0 %845 }
 0x889   : > { %v850_v18 = vmul.f32 0.03125, %v846_v17 }
 0x88b   : > { %v852_v19 = vadd.f32 1e-12, %v850_v18 }
 0x88c   : > { %v849_v20 = vpop.xlane.xlu0 %848 }
 0x88d   : > { %1580 = vrsqrt.f32 %v852_v19  ;;  %v851_v21 = vmul.f32 0.03125, %v849_v20 }
 0x88f   : > { %v853_v22 = vadd.f32 1e-12, %v851_v21 }
 0x891   : > { %1582 = vrsqrt.f32 %v853_v22 }
 0x897   : > { %v1581_v24 = vpop.eup %1580 }
 0x898   : > { %v856_v26 = vmul.f32 %v1581_v24, %v840_v10 }
 0x89a   : > { %v862_v29 = vmul.f32 %v861_v25, %v856_v26 }
 0x89b   : > { %v1583_v28 = vpop.eup %1582 }
 0x89c   : > { %v857_v30 = vmul.f32 %v1583_v28, %v841_v12  ;;  %v868_v36 = vadd.f32 %v867_v32, %v862_v29 }
 0x89e   : > { %v863_v35 = vmul.f32 %v861_v25, %v857_v30 }
 0x8a0   : > { %v869_v38 = vadd.f32 %v867_v32, %v863_v35 }
 0x8a2   : > { %v870_v40 = vpack.c.bf16 %v869_v38, %v868_v36 }
 0x8a4   : > { %1473 = vmatmul.mubr.msk.bf16.vlgmr.msra.gmra.mrb[8].mxu1 %vm528_vm2, %v870_v40 }
 0x977   : > { %v928_v47 = vpop.f32.mrb[8].mxu1 }
 0x978   : > { %v929_v48 = vadd.f32 %v928_v47, %v878_v46  ;;  %v1474_v49 = vpop.f32.mrb[9].mxu1 }
 0x979   : > { %v931_v50 = vpop.f32.mrb[10].mxu1 }
 0x97a   : > { %v937_v51 = vmul.f32 0.044715, %v929_v48  ;;  %v932_v52 = vadd.f32 %v931_v50, %v878_v46  ;;  %v1475_v53 = vpop.f32.mrb[11].mxu1  ;;  %v935_v1 = vmul.f32 0.5, %v929_v48  ;;  %v1593_v50 = vld [vmem:[%s1950_s8 + $0x14] ss:$8 sps:$4 sm:$0xff] (!%p1391_p6)  }
 0x97c   : > { %v939_v54 = vmul.f32 %v937_v51, %v929_v48  ;;  %v938_v55 = vmul.f32 0.044715, %v932_v52  ;;  %v936_v2 = vmul.f32 0.5, %v932_v52 }
 0x97e   : > { %v941_v56 = vmul.f32 %v939_v54, %v929_v48  ;;  %v940_v57 = vmul.f32 %v938_v55, %v932_v52  ;;  %v1594_v54 = vld [vmem:[%s1950_s8] ss:$8 sps:$4 sm:$0xff] (!%p1391_p6)   ;;  %v1595_v55 = vld [vmem:[%s1950_s8 + $0x10] ss:$8 sps:$4 sm:$0xff] (!%p1391_p6)  }
 0x980   : > { %v943_v58 = vadd.f32 %v941_v56, %v929_v48  ;;  %v942_v59 = vmul.f32 %v940_v57, %v932_v52  ;;  %v1392_v56 = vld [vmem:[%s1949_s7 + $0x2] ss:$0 sm:$0xff] (!%p1391_p6) }
 0x982   : > { %v945_v60 = vmul.f32 0.7978846, %v943_v58  ;;  %v944_v31 = vadd.f32 %v942_v59, %v932_v52 }
 0x984   : > { %1584 = vtanh.f32 %v945_v60  ;;  %v946_v61 = vmul.f32 0.7978846, %v944_v31 }
 0x986   : > { %1586 = vtanh.f32 %v946_v61 }
 0x98e   : > { %v1585_v62 = vpop.eup %1584 }
 0x98f   : > { %v949_v63 = vadd.f32 1.0, %v1585_v62 }
 0x990   : > { %v1587_v0 = vpop.eup %1586 }
 0x991   : > { %v950_v3 = vadd.f32 1.0, %v1587_v0  ;;  %v951_v4 = vmul.f32 %v949_v63, %v935_v1  ;;  %v1396_v63 = vld [vmem:[%s1949_s7 + $0x3] ss:$0 sm:$0xff] (!%p1391_p6) }
 0x993   : > { %v952_v5 = vmul.f32 %v950_v3, %v936_v2 }
 0x995   : > { %v953_v6 = vpack.c.bf16 %v952_v5, %v951_v4 }
 0x997   : > { %1485 = vmatmul.mubr.msk.bf16.vlgmr.msra.gmra.mrb[8].mxu0 %vm990_vm4, %v953_v6 }
 0xa6a   : > { %v1028_v9 = vpop.f32.mrb[8].mxu0 }
 0xa6b   : > { %v1029_v10 = vadd.f32 %v1028_v9, %v965_v8  ;;  %v1486_v11 = vpop.f32.mrb[9].mxu0 }
 0xa6c   : > { %v1031_v12 = vpop.f32.mrb[10].mxu0 }
 0xa6d   : > { %v1032_v13 = vadd.f32 %v1031_v12, %v965_v8  ;;  %v1487_v14 = vpop.f32.mrb[11].mxu0  ;;  %v1035_v33 = vadd.f32 %v1029_v10, %v868_v36  ;;  %v1065_v36 = vsub.s32 6, %v1791_v37 }
 0xa6f   : > { %v1037_v15 = vsel %vm528_vm2, %v1035_v33, 0.0  ;;  %v1036_v34 = vadd.f32 %v1032_v13, %v869_v38  ;;  %v1071_v38 = vsub.s32 7, %v1791_v37  ;;  %v1066_v40 = vrot.slane %v1795_v39, %v1065_v36 }
 0xa70   : > { %1038 = vadd.xlane.f32.xlu1 %v1037_v15  ;;  %v1658_v37 = vmov (!%p1391_p6), 0.0  }
 0xa71   : > { %v1040_v16 = vsel %vm528_vm2, %v1036_v34, 0.0  ;;  %v1072_v42 = vrot.slane %v1795_v39, %v1071_v38  ;;  %1488 = vmatprep.subr.bf16.mxu0 (!%p1391_p6), %v1658_v37  ;;  %v1592_v39 = vld [vmem:[%s1950_s8 + $0x4] ss:$8 sps:$4 sm:$0xff] (!%p1391_p6)   ;;  %1492 = vmatprep.mubr.msk.bf16.mxu0 (!%p1391_p6), %vm1659_vm5, %v1658_v37 }
 0xa72   : > { %1041 = vadd.xlane.f32.xlu0 %v1040_v16  ;;  %1496 = vmatprep.subr.bf16.mxu1 (!%p1391_p6), %v1658_v37 }
 0xa73   : > { %1500 = vmatprep.mubr.msk.bf16.mxu1 (!%p1391_p6), %vm1659_vm5, %v1658_v37  ;;  %1489 = vmatpush3.bf16.msra.mxu0 (!%p1391_p6), %v1592_v39 }
 0xa74   : > { %1490 = vmatprep.subr.bf16.mxu0 (!%p1391_p6), %v1658_v37  ;;  %1497 = vmatpush3.bf16.msra.mxu1 (!%p1391_p6), %v1594_v54 }
 0xa75   : > { %1498 = vmatprep.subr.bf16.mxu1 (!%p1391_p6), %v1658_v37 }
 0xa77   : > { %1491 = vmatpush3.bf16.msra.mxu0 (!%p1391_p6), %v1593_v50 }
 0xa78   : > { %1499 = vmatpush3.bf16.msra.mxu1 (!%p1391_p6), %v1595_v55 }
 0xafd   : > { %v1039_v17 = vpop.xlane.xlu1 %1038 }
 0xafe   : > { %v1043_v18 = vmul.f32 0.03125, %v1039_v17 }
 0xaff   : > { %v1042_v19 = vpop.xlane.xlu0 %1041 }
 0xb00   : > { %v1045_v20 = vsub.f32 %v1035_v33, %v1043_v18  ;;  %v1044_v21 = vmul.f32 0.03125, %v1042_v19 }
 0xb02   : > { %v1046_v22 = vsub.f32 %v1036_v34, %v1044_v21  ;;  %v1047_v23 = vmul.f32 %v1045_v20, %v1045_v20 }
 0xb04   : > { %v1049_v24 = vsel %vm528_vm2, %v1047_v23, 0.0  ;;  %v1048_v25 = vmul.f32 %v1046_v22, %v1046_v22 }
 0xb05   : > { %1050 = vadd.xlane.f32.xlu1 %v1049_v24 }
 0xb06   : > { %v1052_v26 = vsel %vm528_vm2, %v1048_v25, 0.0 }
 0xb07   : > { %1053 = vadd.xlane.f32.xlu0 %v1052_v26 }
 0xb92   : > { %v1051_v27 = vpop.xlane.xlu1 %1050 }
 0xb93   : > { %v1055_v28 = vmul.f32 0.03125, %v1051_v27 }
 0xb94   : > { %v1054_v29 = vpop.xlane.xlu0 %1053 }
 0xb95   : > { %v1057_v30 = vadd.f32 1e-12, %v1055_v28  ;;  %v1056_v32 = vmul.f32 0.03125, %v1054_v29 }
 0xb97   : > { %1588 = vrsqrt.f32 %v1057_v30  ;;  %v1058_v35 = vadd.f32 1e-12, %v1056_v32 }
 0xb99   : > { %1590 = vrsqrt.f32 %v1058_v35 }
 0xba1   : > { %v1589_v41 = vpop.eup %1588 }
 0xba2   : > { %v1061_v43 = vmul.f32 %v1589_v41, %v1045_v20 }
 0xba3   : > { %v1591_v44 = vpop.eup %1590 }
 0xba4   : > { %v1067_v45 = vmul.f32 %v1066_v40, %v1061_v43  ;;  %v1062_v46 = vmul.f32 %v1591_v44, %v1046_v22  ;;  %1080 = sbr.rel (%p1391_p6) target bundleno = 3433 (0xd69), region = 64 }
 0xba6   : > { %v1073_v47 = vadd.f32 %v1072_v42, %v1067_v45  ;;  %v1068_v48 = vmul.f32 %v1066_v40, %v1062_v46 }
 0xba8   : > { %1075 = vst.msk [vmem:[#allocation2] sm:$0xff] %vm528_vm2, %v1073_v47  ;;  %v1074_v49 = vadd.f32 %v1072_v42, %v1068_v48 }
 0xbaa   : > { %1076 = vst.msk [vmem:[#allocation2 + $0x8] sm:$0xff] %vm528_vm2, %v1074_v49  ;;  %v1082_v51 = vrot.slane (!%p1391_p6), %v1074_v49, 7 }
 0xbac   : > { %v1085_v52 = vsel %vm1084_vm6, %v1073_v47, %v1082_v51 }
 0xbad   : > { %v1096_v53 = vpack.c.bf16 %v1085_v52, %v1085_v52 }
 0xbaf   : > { %1493 = vmatmul.mubr.msk.bf16.vlgmr.msra.gmra.mrb[0].mxu0 %vm528_vm2, %v1096_v53 }
 0xc82   : > { %v1150_v57 = vpop.f32.mrb[0].mxu0 }
 0xc83   : > { %v1151_v58 = vadd.f32 %v1392_v56, %v1150_v57  ;;  %v1494_v59 = vpop.f32.mrb[1].mxu0 }
 0xc84   : > { %v1153_v60 = vpop.f32.mrb[2].mxu0 }
 0xc85   : > { %1596 = vtanh.f32 %v1151_v58  ;;  %v1495_v31 = vpop.f32.mrb[3].mxu0 }
 0xc8f   : > { %v1597_v61 = vpop.eup %1596 }
 0xc90   : > { %v1157_v62 = vpack.c.bf16 %v1597_v61, %v1597_v61 }
 0xc92   : > { %1501 = vmatmul.mubr.msk.bf16.vlgmr.msra.gmra.mrb[0].mxu1 %vm528_vm2, %v1157_v62 }
 0xd65   : > { %v1211_v0 = vpop.f32.mrb[0].mxu1 }
 0xd66   : > { %v1212_v1 = vadd.f32 %v1396_v63, %v1211_v0  ;;  %v1502_v2 = vpop.f32.mrb[1].mxu1 }
 0xd67   : > { %v1214_v3 = vpop.f32.mrb[2].mxu1 }
 0xd68   : > { %1217 = vst [vmem:[#allocation3] sm:$0x3] %v1212_v1  ;;  %v1503_v4 = vpop.f32.mrb[3].mxu1 }
 0xd69 PF: > { %s1952_s20 = sadd.s32 4294967295, %s1650_s11   ;;  %s1660_s15 = smov [#allocation3]  }
 0xd6a   : > { %p1907_p7 = scmp.eq.s32.totalorder %s1952_s20, 1  ;;  %s1227_s23 = sshll.u32 %s1660_s15, 4  ;;  %s1228_s23 = int_to_ptr.vmem [resolvable:$true] %s1227_s23 }
 0xd6b   : > { %s1598_s12 = scalar_lea.vmem %s1228_s23, 32  ;;  %p1605_p11 = scmp.lt.s32.totalorder %s1228_s23, %s1228_s23 }
 0xd6c   : > { %p1599_p8 = scmp.ne.s32.totalorder %s1228_s23, %s1598_s12  ;;  %p1606_p12 = scmp.lt.s32.totalorder %s1598_s12, %s1598_s12 }
 0xd6e   : > { %p1600_p9 = pnand %p1599_p8, %p1907_p7  ;;  %p1607_p13 = por %p1606_p12, %p1605_p11 }
 0xd70   : > { %p1601_p10 = pneg %p1600_p9 }
 0xd72   : > { %p1608_p0 = pnand %p1607_p13, %p1601_p10 }
 0xd74   : > { %1611 = shalt.err (!%p1608_p0)
}
 0xd75   : > { %s1612_s25 = scalar_lea.hbm %s1951_s9, 32 }
 0xd76   : > { %p1613_p1 = scmp.ne.s32.totalorder %s1951_s9, %s1612_s25  ;;  %p1618_p4 = scmp.lt.u32.totalorder %s1612_s25, %s1951_s9 }
 0xd78   : > { %p1614_p2 = pnand %p1613_p1, %p1907_p7 }
 0xd7a   : > { %p1615_p3 = pneg %p1614_p2 }
 0xd7c   : > { %p1620_p5 = pnand %p1618_p4, %p1615_p3 }
 0xd7e   : > { %1623 = shalt.err (!%p1620_p5)
}
 0xd7f   : > { %1507 = dma.vmem_to_hbm [thread:$0]  (%p1907_p7), %s1228_s23, 32, %s1951_s9, [#allocation4]  }
 0xd80   : > { %1637 = dma.done.wait (%p1907_p7), [#allocation4], 32  }
 0xd81   : > { %1639 = vsyncadd (%p1907_p7), [#allocation4], 4294967264 }
 0xd82 PF: > { %s20_s11 = sadd.s32 1, %s1650_s11   ;;  %s1954_s30 = smov %s1646_s10 }
 0xd83   : > { %p17_p6 = scmp.ge.s32.totalorder %s20_s11, 4   ;;  %s1955_s10 = smov %s1957_s13 }
 0xd85   :  { %19 = sbr.rel (!%p17_p6) target bundleno = 2 (0x2), region = 110 }
 0xd8c   :  { %1240 = vsyncpa [#allocation4], 1 }
 0xd8d   :  { %1242 = vsyncpa [#allocation4 + $0x1], 1 }

</bundles_post_ra>
